<compile_context>
chip_gen: v7x
topology: tpu7x:2x2x1
jax: 0.10.0
libtpu: 0.0.40
codegen_flags: <defaults>
</compile_context>

<pallas_src>
import math

import jax
import jax.numpy as jnp
from jax.experimental import pallas as pl
from jax.experimental.pallas import tpu as pltpu

LTL_OPS = ["&", "|", "!"]
OP2NARG = {"&": 2, "|": 2, "!": 1}

_LEAF_W = ("w_ih", "w_hh", "b", "w_out", "b_out")
_OP_W = ("w_c", "b_c", "w_ih", "w_hh", "b", "w_out", "b_out")


# ----------------------------- LTL tree -----------------------------

class LTLNode:
    def __init__(self, value, children=()):
        self.value = value
        self.children = list(children)
        self.id = None
        self.size = None


def assign_ids(root):
    nid = 0
    queue = [root]
    while queue:
        n = queue.pop(0)
        n.id = nid
        nid += 1
        queue.extend(n.children)
    root.size = nid
    return nid


def _tree_meta(tree):
    """Postorder list (children before parents) of (node_id, module_key, child_ids)."""
    order = []

    def rec(n):
        for c in n.children:
            rec(c)
        order.append((n.id, n.value.split("_")[0], tuple(c.id for c in n.children)))

    rec(tree)
    return order


# ----------------------------- fused Pallas kernel -----------------------------

def build_fused_tree_forward(tree, modules, D, H, S, B, T, no_hidden):
    """Return fwd(params, obs, masks, prev_h, prev_p) -> (rnn_out, new_h, new_p)
    implemented as ONE pallas_call for the whole tree."""
    node_meta = _tree_meta(tree)
    root_id = tree.id

    # Fixed ordering of distinct module keys used by this tree.
    keys = []
    for _, k, _ in node_meta:
        if k not in keys:
            keys.append(k)
    layout = {}
    off = 0
    for k in keys:
        names = _OP_W if "w_c" in modules[k] else _LEAF_W
        layout[k] = (off, names)
        off += len(names)
    n_w = off

    def kernel(*refs):
        obs_ref, mask_ref, ph_ref, pp_ref = refs[0], refs[1], refs[2], refs[3]
        w_refs = refs[4:4 + n_w]
        nh_ref, np_ref, ro_ref = refs[4 + n_w:]

        def wref(key, name):
            o, names = layout[key]
            return w_refs[o + names.index(name)]

        m = mask_ref[...]                     # (B, 1)
        obs_m = obs_ref[...] * m              # hoisted: shared by every node

        out_state = {}                        # node_id -> (B, S) this step

        # Whole tree unrolled at trace time (children before parents).
        for nid, key, child_ids in node_meta:
            wih = wref(key, "w_ih")           # (rnn_in, 3H), cols r|z|n
            b = wref(key, "b")[...]           # (2, 3H)  [b_ih ; b_hh]

            h_m = ph_ref[nid] * m             # masked previous hidden (B, H)
            p_prev = pp_ref[nid]              # previous parent out_state (B, S)

            # rnn_in = [obs | (in_state) | parent] * m  -> split dots, no concat
            gi = jnp.dot(obs_m, wih[0:D, :], preferred_element_type=jnp.float32)
            if child_ids:
                # combine_state linear, split by child (no lane concat)
                w_c = wref(key, "w_c")
                in_state = wref(key, "b_c")[...]
                for k, cid in enumerate(child_ids):
                    in_state = in_state + jnp.dot(
                        out_state[cid], w_c[k * S:(k + 1) * S, :],
                        preferred_element_type=jnp.float32)
                rest = (jnp.dot(in_state, wih[D:D + S, :],
                                preferred_element_type=jnp.float32)
                        + jnp.dot(p_prev, wih[D + S:D + 2 * S, :],
                                  preferred_element_type=jnp.float32))
            else:
                rest = jnp.dot(p_prev, wih[D:D + S, :],
                               preferred_element_type=jnp.float32)
            gi = gi + rest * m + b[0:1, :]
            gh = (jnp.dot(h_m, wref(key, "w_hh")[...],
                          preferred_element_type=jnp.float32) + b[1:2, :])

            # GRU update; r/z sigmoid fused into one EUP call.
            rz = jax.nn.sigmoid(gi[:, :2 * H] + gh[:, :2 * H])
            r = rz[:, :H]
            z = rz[:, H:]
            n = jnp.tanh(gi[:, 2 * H:] + r * gh[:, 2 * H:])
            h_new = (1.0 - z) * n + z * h_m

            b_out = wref(key, "b_out")[...]
            if no_hidden:
                h_store = jnp.zeros_like(h_new)
                st = jnp.broadcast_to(b_out, (h_new.shape[0], S))  # out_linear(0)
            else:
                h_store = h_new
                st = (jnp.dot(h_new, wref(key, "w_out")[...],
                              preferred_element_type=jnp.float32) + b_out)

            out_state[nid] = st
            nh_ref[nid] = h_store
            for cid in child_ids:
                np_ref[cid] = st              # becomes the child's next parent state
            if nid == root_id:
                ro_ref[...] = h_new           # rnn_out (pre no_hidden zeroing)
                np_ref[nid] = jnp.zeros_like(st)   # root has no parent

    vmem = pl.BlockSpec(memory_space=pltpu.MemorySpace.VMEM)
    call = pl.pallas_call(
        kernel,
        out_shape=(
            jax.ShapeDtypeStruct((T, B, H), jnp.float32),   # new hidden, all nodes
            jax.ShapeDtypeStruct((T, B, S), jnp.float32),   # new parent states
            jax.ShapeDtypeStruct((B, H), jnp.float32),      # rnn_out (root)
        ),
        in_specs=[vmem] * (4 + n_w),
        out_specs=(vmem, vmem, vmem),
    )

    def flat_weights(params):
        ws = []
        for k in keys:
            for nm in layout[k][1]:
                ws.append(params[k][nm])
        return ws

    def fwd(params, obs, masks, prev_h, prev_p):
        mask = masks.reshape(-1, 1).astype(jnp.float32)
        new_h, new_p, rnn_out = call(obs, mask, prev_h, prev_p, *flat_weights(params))
        return rnn_out, new_h, new_p

    return fwd


# ----------------------------- pure-JAX reference -----------------------------

def build_ref_tree_forward(tree, modules, D, H, S, B, T, no_hidden):
    node_meta = _tree_meta(tree)
    root_id = tree.id

    def fwd(params, obs, masks, prev_h, prev_p):
        mask = masks.reshape(-1, 1).astype(jnp.float32)
        new_h = [None] * T
        new_p = [None] * T
        out_states = {}
        rnn_out = None
        for nid, key, child_ids in node_meta:
            p = params[key]
            if child_ids:
                cs = jnp.concatenate([out_states[c] for c in child_ids], axis=-1)
                in_state = cs @ p["w_c"] + p["b_c"]
                x = jnp.concatenate([obs, in_state, prev_p[nid]], axis=-1)
            else:
                x = jnp.concatenate([obs, prev_p[nid]], axis=-1)
            x = x * mask
            h = prev_h[nid] * mask
            gi = x @ p["w_ih"] + p["b"][0:1]
            gh = h @ p["w_hh"] + p["b"][1:2]
            r = jax.nn.sigmoid(gi[:, :H] + gh[:, :H])
            z = jax.nn.sigmoid(gi[:, H:2 * H] + gh[:, H:2 * H])
            n = jnp.tanh(gi[:, 2 * H:] + r * gh[:, 2 * H:])
            h_new = (1.0 - z) * n + z * h
            if no_hidden:
                h_store = jnp.zeros_like(h_new)
                st = jnp.broadcast_to(p["b_out"], (h_new.shape[0], S))
            else:
                h_store = h_new
                st = h_new @ p["w_out"] + p["b_out"]
            out_states[nid] = st
            new_h[nid] = h_store
            for cid in child_ids:
                new_p[cid] = st
            if nid == root_id:
                rnn_out = h_new
                new_p[nid] = jnp.zeros_like(st)
        return rnn_out, jnp.stack(new_h), jnp.stack(new_p)

    return fwd


# ----------------------------- parameters -----------------------------

def _linear_init(key, out_f, in_f):
    # PyTorch nn.Linear default: U(-1/sqrt(fan_in), 1/sqrt(fan_in))
    kw, kb = jax.random.split(key)
    bound = 1.0 / math.sqrt(in_f)
    w = jax.random.uniform(kw, (out_f, in_f), jnp.float32, -bound, bound)
    b = jax.random.uniform(kb, (out_f,), jnp.float32, -bound, bound)
    return w, b


def init_base_policy(key, input_size, state_size, rnn_size, n_args):
    """BasePolicy params (env != Craft, has_arg=False, rnn_depth=1).

    Weights pre-transposed to (in_features, out_features); GRU gates packed
    as columns r|z|n so each step is 2 MXU dots.
    """
    n_states = 2 if n_args else 1
    rnn_input = input_size + state_size * n_states
    ks = jax.random.split(key, 4)
    orth = jax.nn.initializers.orthogonal()
    H = rnn_size

    p = {}
    if n_args:
        w, b = _linear_init(ks[0], state_size, n_args * state_size)
        p["w_c"] = w.T                                   # (n_args*S, S)
        p["b_c"] = b.reshape(1, state_size)

    w_ih = orth(ks[1], (3 * H, rnn_input), jnp.float32)  # orthogonal init (r,z,n rows)
    w_hh = orth(ks[2], (3 * H, H), jnp.float32)
    p["w_ih"] = w_ih.T                                   # (rnn_input, 3H), cols r|z|n
    p["w_hh"] = w_hh.T                                   # (H, 3H)
    p["b"] = jnp.zeros((2, 3 * H), jnp.float32)          # [b_ih; b_hh], init 0

    wo, bo = _linear_init(ks[3], state_size, rnn_size)   # out_linear (rnn_depth == 1)
    p["w_out"] = wo.T                                    # (H, S)
    p["b_out"] = bo.reshape(1, state_size)
    return p


# ----------------------------- policy -----------------------------

class LTLPolicyPallas:
    """JAX/Pallas re-implementation of LTLPolicy.forward for the chosen config."""

    def __init__(self, ltl_tree, symbols, obs_dim, state_size, rnn_size, key):
        self.ltl_tree = ltl_tree
        self.tree_size = ltl_tree.size
        self.state_size = state_size
        self.rnn_size = rnn_size
        self.obs_dim = obs_dim
        input_size = obs_dim  # flat Box observation_space, lang_emb = False

        self.modules = {}
        keys = jax.random.split(key, len(symbols) + len(LTL_OPS))
        ki = 0
        for sym in symbols:
            if "C_" in sym:
                continue
            self.modules[sym] = init_base_policy(
                keys[ki], input_size, state_size, rnn_size, n_args=0)
            ki += 1
        # args.baseline == False -> operator modules
        for op in LTL_OPS:
            self.modules[op] = init_base_policy(
                keys[ki], input_size, state_size, rnn_size, n_args=OP2NARG[op])
            ki += 1
        # TODO(synk): ImageEmbedding / LangEmbedding / Craft 'C' (obs_linear,
        # combine_obs) branches are gated off by this config and not implemented.

        self._fwd_cache = {}
        self.reset()

    def reset(self):
        # Stacked recurrent state: (tree_size, B, H) / (tree_size, B, S).
        self.prev_hidden = None
        self.prev_parent = None

    def _get_fwd(self, no_hidden, use_pallas, B):
        key = (bool(no_hidden), bool(use_pallas), int(B))
        if key not in self._fwd_cache:
            builder = build_fused_tree_forward if use_pallas else build_ref_tree_forward
            fwd = builder(self.ltl_tree, self.modules, self.obs_dim,
                          self.rnn_size, self.state_size, B, self.tree_size,
                          bool(no_hidden))
            # Donate the stacked state buffers so XLA can alias them with the
            # kernel's new-state outputs.
            self._fwd_cache[key] = jax.jit(fwd, donate_argnums=(3, 4))
        return self._fwd_cache[key]

    def forward(self, obs, masks, no_hidden=False, use_pallas=True):
        if obs.ndim == 1:
            obs = obs[None, :]
        B = obs.shape[0]
        T, H, S = self.tree_size, self.rnn_size, self.state_size
        if self.prev_hidden is None or self.prev_hidden.shape[1] != B:
            self.prev_hidden = jnp.zeros((T, B, H), jnp.float32)
            self.prev_parent = jnp.zeros((T, B, S), jnp.float32)
        fwd = self._get_fwd(no_hidden, use_pallas, B)
        rnn_out, self.prev_hidden, self.prev_parent = fwd(
            self.modules, obs, masks, self.prev_hidden, self.prev_parent)
        return rnn_out  # == rnn_out.squeeze(0): (batch, rnn_size)


# ----------------------------- main -----------------------------

if __name__ == "__main__":
    B, OBS_DIM, STATE_SIZE, RNN_SIZE = 2, 32, 16, 32

    key = jax.random.PRNGKey(0)
    k_param, k_obs1, k_obs2 = jax.random.split(key, 3)

    # formula: a & b
    tree = LTLNode("&", [LTLNode("a"), LTLNode("b")])
    assign_ids(tree)

    policy = LTLPolicyPallas(tree, ["a", "b"], OBS_DIM, STATE_SIZE, RNN_SIZE,
                             k_param)

    obs1 = jax.random.normal(k_obs1, (B, OBS_DIM), dtype=jnp.float32)
    obs2 = jax.random.normal(k_obs2, (B, OBS_DIM), dtype=jnp.float32)
    masks = jnp.ones((B,), dtype=jnp.float32)

    # two recurrent steps through the fused Pallas kernel (exercises state carry)
    policy.reset()
    out1 = policy.forward(obs1, masks, use_pallas=True)
    out2 = policy.forward(obs2, masks, use_pallas=True)
    out2 = jax.block_until_ready(out2)
    assert out1.shape == (B, RNN_SIZE) and out2.shape == (B, RNN_SIZE)

    # verify the fused kernel against a pure-JAX reference of the same math
    policy.reset()
    ref1 = policy.forward(obs1, masks, use_pallas=False)
    ref2 = policy.forward(obs2, masks, use_pallas=False)
    ref2 = jax.block_until_ready(ref2)

    err1 = float(jnp.max(jnp.abs(out1 - ref1)))
    err2 = float(jnp.max(jnp.abs(out2 - ref2)))
    assert jnp.allclose(out1, ref1, atol=1e-4, rtol=1e-4), err1
    assert jnp.allclose(out2, ref2, atol=1e-4, rtol=1e-4), err2

    print("KERNEL_OK")
</pallas_src>

<mosaic_0001>
module attributes {stable_mosaic.version = 11 : i64} {
  func.func @kernel(%arg0: memref<2x32xf32, #tpu.memory_space<vmem>>, %arg1: memref<2x1xf32, #tpu.memory_space<vmem>>, %arg2: memref<3x2x32xf32, #tpu.memory_space<vmem>>, %arg3: memref<3x2x16xf32, #tpu.memory_space<vmem>>, %arg4: memref<48x96xf32, #tpu.memory_space<vmem>>, %arg5: memref<32x96xf32, #tpu.memory_space<vmem>>, %arg6: memref<2x96xf32, #tpu.memory_space<vmem>>, %arg7: memref<32x16xf32, #tpu.memory_space<vmem>>, %arg8: memref<1x16xf32, #tpu.memory_space<vmem>>, %arg9: memref<48x96xf32, #tpu.memory_space<vmem>>, %arg10: memref<32x96xf32, #tpu.memory_space<vmem>>, %arg11: memref<2x96xf32, #tpu.memory_space<vmem>>, %arg12: memref<32x16xf32, #tpu.memory_space<vmem>>, %arg13: memref<1x16xf32, #tpu.memory_space<vmem>>, %arg14: memref<32x16xf32, #tpu.memory_space<vmem>>, %arg15: memref<1x16xf32, #tpu.memory_space<vmem>>, %arg16: memref<64x96xf32, #tpu.memory_space<vmem>>, %arg17: memref<32x96xf32, #tpu.memory_space<vmem>>, %arg18: memref<2x96xf32, #tpu.memory_space<vmem>>, %arg19: memref<32x16xf32, #tpu.memory_space<vmem>>, %arg20: memref<1x16xf32, #tpu.memory_space<vmem>>, %arg21: memref<3x2x32xf32, #tpu.memory_space<vmem>>, %arg22: memref<3x2x16xf32, #tpu.memory_space<vmem>>, %arg23: memref<2x32xf32, #tpu.memory_space<vmem>>) attributes {dimension_semantics = [], scalar_prefetch = 0 : i64, scratch_operands = 0 : i64, tpu.core_type = #tpu.core_type<tc>} {
    %c0 = arith.constant 0 : index
    %c0_0 = arith.constant 0 : index
    %0 = vector.load %arg1[%c0, %c0_0] : memref<2x1xf32, #tpu.memory_space<vmem>>, vector<2x1xf32>
    %c0_1 = arith.constant 0 : index
    %c0_2 = arith.constant 0 : index
    %1 = vector.load %arg0[%c0_1, %c0_2] : memref<2x32xf32, #tpu.memory_space<vmem>>, vector<2x32xf32>
    %2 = vector.broadcast %0 : vector<2x1xf32> to vector<2x32xf32>
    %3 = arith.mulf %1, %2 : vector<2x32xf32>
    %c0_3 = arith.constant 0 : index
    %c0_4 = arith.constant 0 : index
    %4 = vector.load %arg6[%c0_3, %c0_4] : memref<2x96xf32, #tpu.memory_space<vmem>>, vector<2x96xf32>
    %c1 = arith.constant 1 : index
    %c0_5 = arith.constant 0 : index
    %c0_6 = arith.constant 0 : index
    %5 = vector.load %arg2[%c1, %c0_5, %c0_6] : memref<3x2x32xf32, #tpu.memory_space<vmem>>, vector<1x2x32xf32>
    %6 = vector.shape_cast %5 : vector<1x2x32xf32> to vector<2x32xf32>
    %7 = vector.broadcast %0 : vector<2x1xf32> to vector<2x32xf32>
    %8 = arith.mulf %6, %7 : vector<2x32xf32>
    %c1_7 = arith.constant 1 : index
    %c0_8 = arith.constant 0 : index
    %c0_9 = arith.constant 0 : index
    %9 = vector.load %arg3[%c1_7, %c0_8, %c0_9] : memref<3x2x16xf32, #tpu.memory_space<vmem>>, vector<1x2x16xf32>
    %10 = vector.shape_cast %9 : vector<1x2x16xf32> to vector<2x16xf32>
    %c0_10 = arith.constant 0 : index
    %c0_11 = arith.constant 0 : index
    %11 = vector.load %arg4[%c0_10, %c0_11] : memref<48x96xf32, #tpu.memory_space<vmem>>, vector<32x96xf32>
    %cst = arith.constant dense<0.000000e+00> : vector<2x96xf32>
    %12 = tpu.matmul %3, %11, %cst {dimension_numbers = #tpu.dot_dimension_numbers<[1], [0], [0], [1], [0, 0, 1, 1], [], []>} : vector<2x32xf32>, vector<32x96xf32>, vector<2x96xf32> -> vector<2x96xf32>
    %c32 = arith.constant 32 : index
    %c0_12 = arith.constant 0 : index
    %13 = vector.load %arg4[%c32, %c0_12] : memref<48x96xf32, #tpu.memory_space<vmem>>, vector<16x96xf32>
    %cst_13 = arith.constant dense<0.000000e+00> : vector<2x96xf32>
    %14 = tpu.matmul %10, %13, %cst_13 {dimension_numbers = #tpu.dot_dimension_numbers<[1], [0], [0], [1], [0, 0, 1, 1], [], []>} : vector<2x16xf32>, vector<16x96xf32>, vector<2x96xf32> -> vector<2x96xf32>
    %15 = vector.broadcast %0 : vector<2x1xf32> to vector<2x96xf32>
    %16 = arith.mulf %14, %15 : vector<2x96xf32>
    %17 = arith.addf %12, %16 : vector<2x96xf32>
    %18 = vector.extract_strided_slice %4 {offsets = [0, 0], sizes = [1, 96], strides = [1, 1]} : vector<2x96xf32> to vector<1x96xf32>
    %19 = vector.broadcast %18 : vector<1x96xf32> to vector<2x96xf32>
    %20 = arith.addf %17, %19 : vector<2x96xf32>
    %c0_14 = arith.constant 0 : index
    %c0_15 = arith.constant 0 : index
    %21 = vector.load %arg5[%c0_14, %c0_15] : memref<32x96xf32, #tpu.memory_space<vmem>>, vector<32x96xf32>
    %cst_16 = arith.constant dense<0.000000e+00> : vector<2x96xf32>
    %22 = tpu.matmul %8, %21, %cst_16 {dimension_numbers = #tpu.dot_dimension_numbers<[1], [0], [0], [1], [0, 0, 1, 1], [], []>} : vector<2x32xf32>, vector<32x96xf32>, vector<2x96xf32> -> vector<2x96xf32>
    %23 = vector.extract_strided_slice %4 {offsets = [1, 0], sizes = [1, 96], strides = [1, 1]} : vector<2x96xf32> to vector<1x96xf32>
    %24 = vector.broadcast %23 : vector<1x96xf32> to vector<2x96xf32>
    %25 = arith.addf %22, %24 : vector<2x96xf32>
    %26 = vector.extract_strided_slice %20 {offsets = [0, 0], sizes = [2, 64], strides = [1, 1]} : vector<2x96xf32> to vector<2x64xf32>
    %27 = vector.extract_strided_slice %25 {offsets = [0, 0], sizes = [2, 64], strides = [1, 1]} : vector<2x96xf32> to vector<2x64xf32>
    %28 = arith.addf %26, %27 : vector<2x64xf32>
    %29 = arith.negf %28 : vector<2x64xf32>
    %30 = math.exp %29 : vector<2x64xf32>
    %cst_17 = arith.constant 1.000000e+00 : f32
    %31 = vector.broadcast %cst_17 : f32 to vector<2x64xf32>
    %32 = arith.addf %31, %30 : vector<2x64xf32>
    %33 = arith.divf %31, %32 : vector<2x64xf32>
    %34 = vector.extract_strided_slice %33 {offsets = [0, 0], sizes = [2, 32], strides = [1, 1]} : vector<2x64xf32> to vector<2x32xf32>
    %35 = vector.extract_strided_slice %33 {offsets = [0, 32], sizes = [2, 32], strides = [1, 1]} : vector<2x64xf32> to vector<2x32xf32>
    %36 = vector.extract_strided_slice %20 {offsets = [0, 64], sizes = [2, 32], strides = [1, 1]} : vector<2x96xf32> to vector<2x32xf32>
    %37 = vector.extract_strided_slice %25 {offsets = [0, 64], sizes = [2, 32], strides = [1, 1]} : vector<2x96xf32> to vector<2x32xf32>
    %38 = arith.mulf %34, %37 : vector<2x32xf32>
    %39 = arith.addf %36, %38 : vector<2x32xf32>
    %40 = math.tanh %39 : vector<2x32xf32>
    %cst_18 = arith.constant 1.000000e+00 : f32
    %41 = vector.broadcast %cst_18 : f32 to vector<2x32xf32>
    %42 = arith.subf %41, %35 : vector<2x32xf32>
    %43 = arith.mulf %42, %40 : vector<2x32xf32>
    %44 = arith.mulf %35, %8 : vector<2x32xf32>
    %45 = arith.addf %43, %44 : vector<2x32xf32>
    %c0_19 = arith.constant 0 : index
    %c0_20 = arith.constant 0 : index
    %46 = vector.load %arg8[%c0_19, %c0_20] : memref<1x16xf32, #tpu.memory_space<vmem>>, vector<1x16xf32>
    %c0_21 = arith.constant 0 : index
    %c0_22 = arith.constant 0 : index
    %47 = vector.load %arg7[%c0_21, %c0_22] : memref<32x16xf32, #tpu.memory_space<vmem>>, vector<32x16xf32>
    %cst_23 = arith.constant dense<0.000000e+00> : vector<2x16xf32>
    %48 = tpu.matmul %45, %47, %cst_23 {dimension_numbers = #tpu.dot_dimension_numbers<[1], [0], [0], [1], [0, 0, 1, 1], [], []>} : vector<2x32xf32>, vector<32x16xf32>, vector<2x16xf32> -> vector<2x16xf32>
    %49 = vector.broadcast %46 : vector<1x16xf32> to vector<2x16xf32>
    %50 = arith.addf %48, %49 : vector<2x16xf32>
    %c1_24 = arith.constant 1 : index
    %c0_25 = arith.constant 0 : index
    %c0_26 = arith.constant 0 : index
    %51 = vector.load %arg21[%c1_24, %c0_25, %c0_26] : memref<3x2x32xf32, #tpu.memory_space<vmem>>, vector<1x2x32xf32>
    %52 = vector.shape_cast %51 : vector<1x2x32xf32> to vector<2x32xf32>
    %53 = vector.shape_cast %45 : vector<2x32xf32> to vector<1x2x32xf32>
    tpu.vector_store %arg21[%c1_24, %c0_25, %c0_26], %53 {strides = array<i32>} : memref<3x2x32xf32, #tpu.memory_space<vmem>>, vector<1x2x32xf32>,
    %c0_27 = arith.constant 0 : index
    %c0_28 = arith.constant 0 : index
    %54 = vector.load %arg11[%c0_27, %c0_28] : memref<2x96xf32, #tpu.memory_space<vmem>>, vector<2x96xf32>
    %c2 = arith.constant 2 : index
    %c0_29 = arith.constant 0 : index
    %c0_30 = arith.constant 0 : index
    %55 = vector.load %arg2[%c2, %c0_29, %c0_30] : memref<3x2x32xf32, #tpu.memory_space<vmem>>, vector<1x2x32xf32>
    %56 = vector.shape_cast %55 : vector<1x2x32xf32> to vector<2x32xf32>
    %57 = vector.broadcast %0 : vector<2x1xf32> to vector<2x32xf32>
    %58 = arith.mulf %56, %57 : vector<2x32xf32>
    %c2_31 = arith.constant 2 : index
    %c0_32 = arith.constant 0 : index
    %c0_33 = arith.constant 0 : index
    %59 = vector.load %arg3[%c2_31, %c0_32, %c0_33] : memref<3x2x16xf32, #tpu.memory_space<vmem>>, vector<1x2x16xf32>
    %60 = vector.shape_cast %59 : vector<1x2x16xf32> to vector<2x16xf32>
    %c0_34 = arith.constant 0 : index
    %c0_35 = arith.constant 0 : index
    %61 = vector.load %arg9[%c0_34, %c0_35] : memref<48x96xf32, #tpu.memory_space<vmem>>, vector<32x96xf32>
    %cst_36 = arith.constant dense<0.000000e+00> : vector<2x96xf32>
    %62 = tpu.matmul %3, %61, %cst_36 {dimension_numbers = #tpu.dot_dimension_numbers<[1], [0], [0], [1], [0, 0, 1, 1], [], []>} : vector<2x32xf32>, vector<32x96xf32>, vector<2x96xf32> -> vector<2x96xf32>
    %c32_37 = arith.constant 32 : index
    %c0_38 = arith.constant 0 : index
    %63 = vector.load %arg9[%c32_37, %c0_38] : memref<48x96xf32, #tpu.memory_space<vmem>>, vector<16x96xf32>
    %cst_39 = arith.constant dense<0.000000e+00> : vector<2x96xf32>
    %64 = tpu.matmul %60, %63, %cst_39 {dimension_numbers = #tpu.dot_dimension_numbers<[1], [0], [0], [1], [0, 0, 1, 1], [], []>} : vector<2x16xf32>, vector<16x96xf32>, vector<2x96xf32> -> vector<2x96xf32>
    %65 = vector.broadcast %0 : vector<2x1xf32> to vector<2x96xf32>
    %66 = arith.mulf %64, %65 : vector<2x96xf32>
    %67 = arith.addf %62, %66 : vector<2x96xf32>
    %68 = vector.extract_strided_slice %54 {offsets = [0, 0], sizes = [1, 96], strides = [1, 1]} : vector<2x96xf32> to vector<1x96xf32>
    %69 = vector.broadcast %68 : vector<1x96xf32> to vector<2x96xf32>
    %70 = arith.addf %67, %69 : vector<2x96xf32>
    %c0_40 = arith.constant 0 : index
    %c0_41 = arith.constant 0 : index
    %71 = vector.load %arg10[%c0_40, %c0_41] : memref<32x96xf32, #tpu.memory_space<vmem>>, vector<32x96xf32>
    %cst_42 = arith.constant dense<0.000000e+00> : vector<2x96xf32>
    %72 = tpu.matmul %58, %71, %cst_42 {dimension_numbers = #tpu.dot_dimension_numbers<[1], [0], [0], [1], [0, 0, 1, 1], [], []>} : vector<2x32xf32>, vector<32x96xf32>, vector<2x96xf32> -> vector<2x96xf32>
    %73 = vector.extract_strided_slice %54 {offsets = [1, 0], sizes = [1, 96], strides = [1, 1]} : vector<2x96xf32> to vector<1x96xf32>
    %74 = vector.broadcast %73 : vector<1x96xf32> to vector<2x96xf32>
    %75 = arith.addf %72, %74 : vector<2x96xf32>
    %76 = vector.extract_strided_slice %70 {offsets = [0, 0], sizes = [2, 64], strides = [1, 1]} : vector<2x96xf32> to vector<2x64xf32>
    %77 = vector.extract_strided_slice %75 {offsets = [0, 0], sizes = [2, 64], strides = [1, 1]} : vector<2x96xf32> to vector<2x64xf32>
    %78 = arith.addf %76, %77 : vector<2x64xf32>
    %79 = arith.negf %78 : vector<2x64xf32>
    %80 = math.exp %79 : vector<2x64xf32>
    %cst_43 = arith.constant 1.000000e+00 : f32
    %81 = vector.broadcast %cst_43 : f32 to vector<2x64xf32>
    %82 = arith.addf %81, %80 : vector<2x64xf32>
    %83 = arith.divf %81, %82 : vector<2x64xf32>
    %84 = vector.extract_strided_slice %83 {offsets = [0, 0], sizes = [2, 32], strides = [1, 1]} : vector<2x64xf32> to vector<2x32xf32>
    %85 = vector.extract_strided_slice %83 {offsets = [0, 32], sizes = [2, 32], strides = [1, 1]} : vector<2x64xf32> to vector<2x32xf32>
    %86 = vector.extract_strided_slice %70 {offsets = [0, 64], sizes = [2, 32], strides = [1, 1]} : vector<2x96xf32> to vector<2x32xf32>
    %87 = vector.extract_strided_slice %75 {offsets = [0, 64], sizes = [2, 32], strides = [1, 1]} : vector<2x96xf32> to vector<2x32xf32>
    %88 = arith.mulf %84, %87 : vector<2x32xf32>
    %89 = arith.addf %86, %88 : vector<2x32xf32>
    %90 = math.tanh %89 : vector<2x32xf32>
    %cst_44 = arith.constant 1.000000e+00 : f32
    %91 = vector.broadcast %cst_44 : f32 to vector<2x32xf32>
    %92 = arith.subf %91, %85 : vector<2x32xf32>
    %93 = arith.mulf %92, %90 : vector<2x32xf32>
    %94 = arith.mulf %85, %58 : vector<2x32xf32>
    %95 = arith.addf %93, %94 : vector<2x32xf32>
    %c0_45 = arith.constant 0 : index
    %c0_46 = arith.constant 0 : index
    %96 = vector.load %arg13[%c0_45, %c0_46] : memref<1x16xf32, #tpu.memory_space<vmem>>, vector<1x16xf32>
    %c0_47 = arith.constant 0 : index
    %c0_48 = arith.constant 0 : index
    %97 = vector.load %arg12[%c0_47, %c0_48] : memref<32x16xf32, #tpu.memory_space<vmem>>, vector<32x16xf32>
    %cst_49 = arith.constant dense<0.000000e+00> : vector<2x16xf32>
    %98 = tpu.matmul %95, %97, %cst_49 {dimension_numbers = #tpu.dot_dimension_numbers<[1], [0], [0], [1], [0, 0, 1, 1], [], []>} : vector<2x32xf32>, vector<32x16xf32>, vector<2x16xf32> -> vector<2x16xf32>
    %99 = vector.broadcast %96 : vector<1x16xf32> to vector<2x16xf32>
    %100 = arith.addf %98, %99 : vector<2x16xf32>
    %c2_50 = arith.constant 2 : index
    %c0_51 = arith.constant 0 : index
    %c0_52 = arith.constant 0 : index
    %101 = vector.load %arg21[%c2_50, %c0_51, %c0_52] : memref<3x2x32xf32, #tpu.memory_space<vmem>>, vector<1x2x32xf32>
    %102 = vector.shape_cast %101 : vector<1x2x32xf32> to vector<2x32xf32>
    %103 = vector.shape_cast %95 : vector<2x32xf32> to vector<1x2x32xf32>
    tpu.vector_store %arg21[%c2_50, %c0_51, %c0_52], %103 {strides = array<i32>} : memref<3x2x32xf32, #tpu.memory_space<vmem>>, vector<1x2x32xf32>,
    %c0_53 = arith.constant 0 : index
    %c0_54 = arith.constant 0 : index
    %104 = vector.load %arg18[%c0_53, %c0_54] : memref<2x96xf32, #tpu.memory_space<vmem>>, vector<2x96xf32>
    %c0_55 = arith.constant 0 : index
    %c0_56 = arith.constant 0 : index
    %c0_57 = arith.constant 0 : index
    %105 = vector.load %arg2[%c0_55, %c0_56, %c0_57] : memref<3x2x32xf32, #tpu.memory_space<vmem>>, vector<1x2x32xf32>
    %106 = vector.shape_cast %105 : vector<1x2x32xf32> to vector<2x32xf32>
    %107 = vector.broadcast %0 : vector<2x1xf32> to vector<2x32xf32>
    %108 = arith.mulf %106, %107 : vector<2x32xf32>
    %c0_58 = arith.constant 0 : index
    %c0_59 = arith.constant 0 : index
    %c0_60 = arith.constant 0 : index
    %109 = vector.load %arg3[%c0_58, %c0_59, %c0_60] : memref<3x2x16xf32, #tpu.memory_space<vmem>>, vector<1x2x16xf32>
    %110 = vector.shape_cast %109 : vector<1x2x16xf32> to vector<2x16xf32>
    %c0_61 = arith.constant 0 : index
    %c0_62 = arith.constant 0 : index
    %111 = vector.load %arg16[%c0_61, %c0_62] : memref<64x96xf32, #tpu.memory_space<vmem>>, vector<32x96xf32>
    %cst_63 = arith.constant dense<0.000000e+00> : vector<2x96xf32>
    %112 = tpu.matmul %3, %111, %cst_63 {dimension_numbers = #tpu.dot_dimension_numbers<[1], [0], [0], [1], [0, 0, 1, 1], [], []>} : vector<2x32xf32>, vector<32x96xf32>, vector<2x96xf32> -> vector<2x96xf32>
    %c0_64 = arith.constant 0 : index
    %c0_65 = arith.constant 0 : index
    %113 = vector.load %arg15[%c0_64, %c0_65] : memref<1x16xf32, #tpu.memory_space<vmem>>, vector<1x16xf32>
    %c0_66 = arith.constant 0 : index
    %c0_67 = arith.constant 0 : index
    %114 = vector.load %arg14[%c0_66, %c0_67] : memref<32x16xf32, #tpu.memory_space<vmem>>, vector<16x16xf32>
    %cst_68 = arith.constant dense<0.000000e+00> : vector<2x16xf32>
    %115 = tpu.matmul %50, %114, %cst_68 {dimension_numbers = #tpu.dot_dimension_numbers<[1], [0], [0], [1], [0, 0, 1, 1], [], []>} : vector<2x16xf32>, vector<16x16xf32>, vector<2x16xf32> -> vector<2x16xf32>
    %116 = vector.broadcast %113 : vector<1x16xf32> to vector<2x16xf32>
    %117 = arith.addf %116, %115 : vector<2x16xf32>
    %c16 = arith.constant 16 : index
    %c0_69 = arith.constant 0 : index
    %118 = vector.load %arg14[%c16, %c0_69] : memref<32x16xf32, #tpu.memory_space<vmem>>, vector<16x16xf32>
    %cst_70 = arith.constant dense<0.000000e+00> : vector<2x16xf32>
    %119 = tpu.matmul %100, %118, %cst_70 {dimension_numbers = #tpu.dot_dimension_numbers<[1], [0], [0], [1], [0, 0, 1, 1], [], []>} : vector<2x16xf32>, vector<16x16xf32>, vector<2x16xf32> -> vector<2x16xf32>
    %120 = arith.addf %117, %119 : vector<2x16xf32>
    %c32_71 = arith.constant 32 : index
    %c0_72 = arith.constant 0 : index
    %121 = vector.load %arg16[%c32_71, %c0_72] : memref<64x96xf32, #tpu.memory_space<vmem>>, vector<16x96xf32>
    %cst_73 = arith.constant dense<0.000000e+00> : vector<2x96xf32>
    %122 = tpu.matmul %120, %121, %cst_73 {dimension_numbers = #tpu.dot_dimension_numbers<[1], [0], [0], [1], [0, 0, 1, 1], [], []>} : vector<2x16xf32>, vector<16x96xf32>, vector<2x96xf32> -> vector<2x96xf32>
    %c48 = arith.constant 48 : index
    %c0_74 = arith.constant 0 : index
    %123 = vector.load %arg16[%c48, %c0_74] : memref<64x96xf32, #tpu.memory_space<vmem>>, vector<16x96xf32>
    %cst_75 = arith.constant dense<0.000000e+00> : vector<2x96xf32>
    %124 = tpu.matmul %110, %123, %cst_75 {dimension_numbers = #tpu.dot_dimension_numbers<[1], [0], [0], [1], [0, 0, 1, 1], [], []>} : vector<2x16xf32>, vector<16x96xf32>, vector<2x96xf32> -> vector<2x96xf32>
    %125 = arith.addf %122, %124 : vector<2x96xf32>
    %126 = vector.broadcast %0 : vector<2x1xf32> to vector<2x96xf32>
    %127 = arith.mulf %125, %126 : vector<2x96xf32>
    %128 = arith.addf %112, %127 : vector<2x96xf32>
    %129 = vector.extract_strided_slice %104 {offsets = [0, 0], sizes = [1, 96], strides = [1, 1]} : vector<2x96xf32> to vector<1x96xf32>
    %130 = vector.broadcast %129 : vector<1x96xf32> to vector<2x96xf32>
    %131 = arith.addf %128, %130 : vector<2x96xf32>
    %c0_76 = arith.constant 0 : index
    %c0_77 = arith.constant 0 : index
    %132 = vector.load %arg17[%c0_76, %c0_77] : memref<32x96xf32, #tpu.memory_space<vmem>>, vector<32x96xf32>
    %cst_78 = arith.constant dense<0.000000e+00> : vector<2x96xf32>
    %133 = tpu.matmul %108, %132, %cst_78 {dimension_numbers = #tpu.dot_dimension_numbers<[1], [0], [0], [1], [0, 0, 1, 1], [], []>} : vector<2x32xf32>, vector<32x96xf32>, vector<2x96xf32> -> vector<2x96xf32>
    %134 = vector.extract_strided_slice %104 {offsets = [1, 0], sizes = [1, 96], strides = [1, 1]} : vector<2x96xf32> to vector<1x96xf32>
    %135 = vector.broadcast %134 : vector<1x96xf32> to vector<2x96xf32>
    %136 = arith.addf %133, %135 : vector<2x96xf32>
    %137 = vector.extract_strided_slice %131 {offsets = [0, 0], sizes = [2, 64], strides = [1, 1]} : vector<2x96xf32> to vector<2x64xf32>
    %138 = vector.extract_strided_slice %136 {offsets = [0, 0], sizes = [2, 64], strides = [1, 1]} : vector<2x96xf32> to vector<2x64xf32>
    %139 = arith.addf %137, %138 : vector<2x64xf32>
    %140 = arith.negf %139 : vector<2x64xf32>
    %141 = math.exp %140 : vector<2x64xf32>
    %cst_79 = arith.constant 1.000000e+00 : f32
    %142 = vector.broadcast %cst_79 : f32 to vector<2x64xf32>
    %143 = arith.addf %142, %141 : vector<2x64xf32>
    %144 = arith.divf %142, %143 : vector<2x64xf32>
    %145 = vector.extract_strided_slice %144 {offsets = [0, 0], sizes = [2, 32], strides = [1, 1]} : vector<2x64xf32> to vector<2x32xf32>
    %146 = vector.extract_strided_slice %144 {offsets = [0, 32], sizes = [2, 32], strides = [1, 1]} : vector<2x64xf32> to vector<2x32xf32>
    %147 = vector.extract_strided_slice %131 {offsets = [0, 64], sizes = [2, 32], strides = [1, 1]} : vector<2x96xf32> to vector<2x32xf32>
    %148 = vector.extract_strided_slice %136 {offsets = [0, 64], sizes = [2, 32], strides = [1, 1]} : vector<2x96xf32> to vector<2x32xf32>
    %149 = arith.mulf %145, %148 : vector<2x32xf32>
    %150 = arith.addf %147, %149 : vector<2x32xf32>
    %151 = math.tanh %150 : vector<2x32xf32>
    %cst_80 = arith.constant 1.000000e+00 : f32
    %152 = vector.broadcast %cst_80 : f32 to vector<2x32xf32>
    %153 = arith.subf %152, %146 : vector<2x32xf32>
    %154 = arith.mulf %153, %151 : vector<2x32xf32>
    %155 = arith.mulf %146, %108 : vector<2x32xf32>
    %156 = arith.addf %154, %155 : vector<2x32xf32>
    %c0_81 = arith.constant 0 : index
    %c0_82 = arith.constant 0 : index
    %157 = vector.load %arg20[%c0_81, %c0_82] : memref<1x16xf32, #tpu.memory_space<vmem>>, vector<1x16xf32>
    %c0_83 = arith.constant 0 : index
    %c0_84 = arith.constant 0 : index
    %158 = vector.load %arg19[%c0_83, %c0_84] : memref<32x16xf32, #tpu.memory_space<vmem>>, vector<32x16xf32>
    %cst_85 = arith.constant dense<0.000000e+00> : vector<2x16xf32>
    %159 = tpu.matmul %156, %158, %cst_85 {dimension_numbers = #tpu.dot_dimension_numbers<[1], [0], [0], [1], [0, 0, 1, 1], [], []>} : vector<2x32xf32>, vector<32x16xf32>, vector<2x16xf32> -> vector<2x16xf32>
    %160 = vector.broadcast %157 : vector<1x16xf32> to vector<2x16xf32>
    %161 = arith.addf %159, %160 : vector<2x16xf32>
    %c0_86 = arith.constant 0 : index
    %c0_87 = arith.constant 0 : index
    %c0_88 = arith.constant 0 : index
    %162 = vector.load %arg21[%c0_86, %c0_87, %c0_88] : memref<3x2x32xf32, #tpu.memory_space<vmem>>, vector<1x2x32xf32>
    %163 = vector.shape_cast %162 : vector<1x2x32xf32> to vector<2x32xf32>
    %164 = vector.shape_cast %156 : vector<2x32xf32> to vector<1x2x32xf32>
    tpu.vector_store %arg21[%c0_86, %c0_87, %c0_88], %164 {strides = array<i32>} : memref<3x2x32xf32, #tpu.memory_space<vmem>>, vector<1x2x32xf32>,
    %c1_89 = arith.constant 1 : index
    %c0_90 = arith.constant 0 : index
    %c0_91 = arith.constant 0 : index
    %165 = vector.load %arg22[%c1_89, %c0_90, %c0_91] : memref<3x2x16xf32, #tpu.memory_space<vmem>>, vector<1x2x16xf32>
    %166 = vector.shape_cast %165 : vector<1x2x16xf32> to vector<2x16xf32>
    %167 = vector.shape_cast %161 : vector<2x16xf32> to vector<1x2x16xf32>
    tpu.vector_store %arg22[%c1_89, %c0_90, %c0_91], %167 {strides = array<i32>} : memref<3x2x16xf32, #tpu.memory_space<vmem>>, vector<1x2x16xf32>,
    %c2_92 = arith.constant 2 : index
    %c0_93 = arith.constant 0 : index
    %c0_94 = arith.constant 0 : index
    %168 = vector.load %arg22[%c2_92, %c0_93, %c0_94] : memref<3x2x16xf32, #tpu.memory_space<vmem>>, vector<1x2x16xf32>
    %169 = vector.shape_cast %168 : vector<1x2x16xf32> to vector<2x16xf32>
    %170 = vector.shape_cast %161 : vector<2x16xf32> to vector<1x2x16xf32>
    tpu.vector_store %arg22[%c2_92, %c0_93, %c0_94], %170 {strides = array<i32>} : memref<3x2x16xf32, #tpu.memory_space<vmem>>, vector<1x2x16xf32>,
    %c0_95 = arith.constant 0 : index
    %c0_96 = arith.constant 0 : index
    %171 = vector.load %arg23[%c0_95, %c0_96] : memref<2x32xf32, #tpu.memory_space<vmem>>, vector<2x32xf32>
    tpu.vector_store %arg23[%c0_95, %c0_96], %156 {strides = array<i32>} : memref<2x32xf32, #tpu.memory_space<vmem>>, vector<2x32xf32>,
    %cst_97 = arith.constant 0.000000e+00 : f32
    %172 = vector.broadcast %cst_97 : f32 to vector<2x16xf32>
    %c0_98 = arith.constant 0 : index
    %c0_99 = arith.constant 0 : index
    %c0_100 = arith.constant 0 : index
    %173 = vector.load %arg22[%c0_98, %c0_99, %c0_100] : memref<3x2x16xf32, #tpu.memory_space<vmem>>, vector<1x2x16xf32>
    %174 = vector.shape_cast %173 : vector<1x2x16xf32> to vector<2x16xf32>
    %175 = vector.shape_cast %172 : vector<2x16xf32> to vector<1x2x16xf32>
    tpu.vector_store %arg22[%c0_98, %c0_99, %c0_100], %175 {strides = array<i32>} : memref<3x2x16xf32, #tpu.memory_space<vmem>>, vector<1x2x16xf32>,
    return
  }
}

</mosaic_0001>

<bundles_post_ra>
// kernel: fwd.1
= control target key start
LH: loop header
LB: loop body
LE: loop exit
PB: predicated region body
PF: predicated region fallthrough
CT: control target
= control target key end

     0   :  { %s2570_s0 = inlined_call_operand.hbm [shape: f32[2,32], index: 0, kind: input, shape index: {}]   ;;  %s2571_s1 = inlined_call_operand.vmem [shape: f32[2,1], index: 1, kind: input, shape index: {}]   ;;  %s2572_s2 = inlined_call_operand.vmem [shape: f32[3,2,32], index: 2, kind: input, shape index: {}]   ;;  %s2573_s3 = inlined_call_operand.vmem [shape: f32[3,2,16], index: 3, kind: input, shape index: {}]   ;;  %s2574_s4 = inlined_call_operand.vmem [shape: f32[48,96], index: 4, kind: input, shape index: {}]   ;;  %s2575_s5 = inlined_call_operand.vmem [shape: f32[32,96], index: 5, kind: input, shape index: {}]   ;;  %s2576_s6 = inlined_call_operand.hbm [shape: f32[2,96], index: 6, kind: input, shape index: {}]   ;;  %s2577_s7 = inlined_call_operand.vmem [shape: f32[32,16], index: 7, kind: input, shape index: {}]   ;;  %s2578_s8 = inlined_call_operand.hbm [shape: f32[1,16], index: 8, kind: input, shape index: {}]   ;;  %s2579_s9 = inlined_call_operand.vmem [shape: f32[48,96], index: 9, kind: input, shape index: {}]   ;;  %s2580_s10 = inlined_call_operand.vmem [shape: f32[32,96], index: 10, kind: input, shape index: {}]   ;;  %s2581_s11 = inlined_call_operand.hbm [shape: f32[2,96], index: 11, kind: input, shape index: {}]   ;;  %s2582_s12 = inlined_call_operand.vmem [shape: f32[32,16], index: 12, kind: input, shape index: {}]   ;;  %s2583_s13 = inlined_call_operand.hbm [shape: f32[1,16], index: 13, kind: input, shape index: {}]   ;;  %s2584_s14 = inlined_call_operand.vmem [shape: f32[32,16], index: 14, kind: input, shape index: {}]   ;;  %s2585_s15 = inlined_call_operand.vmem [shape: f32[1,16], index: 15, kind: input, shape index: {}]   ;;  %s2586_s16 = inlined_call_operand.vmem [shape: f32[64,96], index: 16, kind: input, shape index: {}]   ;;  %s2587_s17 = inlined_call_operand.vmem [shape: f32[32,96], index: 17, kind: input, shape index: {}]   ;;  %s2588_s18 = inlined_call_operand.vmem [shape: f32[2,96], index: 18, kind: input, shape index: {}]   ;;  %s2589_s19 = inlined_call_operand.vmem [shape: f32[32,16], index: 19, kind: input, shape index: {}]   ;;  %s2590_s20 = inlined_call_operand.vmem [shape: f32[1,16], index: 20, kind: input, shape index: {}]   ;;  %s2591_s21 = inlined_call_operand.hbm [shape: f32[3,2,32], index: 21, kind: output, shape index: {0}]   ;;  %s2592_s22 = inlined_call_operand.hbm [shape: f32[3,2,16], index: 22, kind: output, shape index: {1}]   ;;  %s2593_s23 = inlined_call_operand.hbm [shape: f32[2,32], index: 23, kind: output, shape index: {2}]  }
   0x1   :  { %2601 = sst [smem:[#allocation20_spill]] %s2570_s0 }
   0x2   :  { %2602 = sst [smem:[#allocation21_spill]] %s2571_s1 }
   0x3   :  { %2603 = sst [smem:[#allocation22_spill]] %s2572_s2 }
   0x4   :  { %2604 = sst [smem:[#allocation23_spill]] %s2573_s3 }
   0x5   :  { %2605 = sst [smem:[#allocation24_spill]] %s2574_s4 }
   0x6   :  { %2606 = sst [smem:[#allocation25_spill]] %s2575_s5 }
   0x7   :  { %2607 = sst [smem:[#allocation26_spill]] %s2576_s6 }
   0x8   :  { %2608 = sst [smem:[#allocation27_spill]] %s2577_s7 }
   0x9   :  { %29 = vsyncpa [#allocation3], 0 }
   0xa   :  { %30 = vsyncpa [#allocation6], 0 }
   0xb   :  { %31 = vsyncpa [#allocation9], 0 }
   0xc   :  { %32 = vsyncpa [#allocation4], 0 }
   0xd   :  { %33 = vsyncpa [#allocation13], 0  ;;  %s2039_s4 = smov [#allocation5]   ;;  %s2040_s24 = smov [#allocation8]  }
   0xe   :  { %s60_s30 = sshll.u32 %s2039_s4, 4  ;;  %s86_s25 = sshll.u32 %s2040_s24, 4  ;;  %s61_s30 = int_to_ptr.vmem [resolvable:$true] %s60_s30  ;;  %s87_s25 = int_to_ptr.vmem [resolvable:$true] %s86_s25 }
   0xf   :  { %s2609_s26 = sld [smem:[#allocation26_spill]] }
  0x15   :  { %s1853_s2 = scalar_lea.hbm %s2609_s26, 32 }
  0x16   :  { %p1854_p0 = scmp.ne.s32.totalorder %s2609_s26, %s1853_s2  ;;  %p1857_p1 = scmp.lt.u32.totalorder %s1853_s2, %s2609_s26 }
  0x18   :  { %p1859_p2 = pnand %p1857_p1, %p1854_p0 }
  0x1a   :  { %1862 = shalt.err (!%p1859_p2)
}
  0x1b   :  { %s1863_s29 = scalar_lea.vmem %s61_s30, 32  ;;  %p1868_p4 = scmp.lt.s32.totalorder %s61_s30, %s61_s30 }
  0x1c   :  { %p1864_p3 = scmp.ne.s32.totalorder %s61_s30, %s1863_s29  ;;  %p1869_p5 = scmp.lt.s32.totalorder %s1863_s29, %s1863_s29 }
  0x1e   :  { %p1870_p6 = por %p1869_p5, %p1868_p4 }
  0x20   :  { %p1871_p7 = pnand %p1870_p6, %p1864_p3 }
  0x22   :  { %1874 = shalt.err (!%p1871_p7)
}
  0x23   :  { %63 = dma.hbm_to_vmem [thread:$0]  %s2609_s26, 32, %s61_s30, [#allocation6]  }
  0x24   :  { %s1875_s5 = scalar_lea.hbm %s2581_s11, 32 }
  0x25   :  { %p1876_p8 = scmp.ne.s32.totalorder %s2581_s11, %s1875_s5  ;;  %p1879_p9 = scmp.lt.u32.totalorder %s1875_s5, %s2581_s11 }
  0x27   :  { %p1881_p10 = pnand %p1879_p9, %p1876_p8 }
  0x29   :  { %1884 = shalt.err (!%p1881_p10)
}
  0x2a   :  { %s1885_s7 = scalar_lea.vmem %s87_s25, 32  ;;  %p1890_p12 = scmp.lt.s32.totalorder %s87_s25, %s87_s25 }
  0x2b   :  { %p1886_p11 = scmp.ne.s32.totalorder %s87_s25, %s1885_s7  ;;  %p1891_p13 = scmp.lt.s32.totalorder %s1885_s7, %s1885_s7 }
  0x2d   :  { %p1892_p0 = por %p1891_p13, %p1890_p12 }
  0x2f   :  { %p1893_p1 = pnand %p1892_p0, %p1886_p11 }
  0x31   :  { %1896 = shalt.err (!%p1893_p1)
}
  0x32   :  { %89 = dma.hbm_to_vmem [thread:$0]  %s2581_s11, 32, %s87_s25, [#allocation9]  }
  0x33   :  { %s2041_s28 = smov [#allocation2]   ;;  %s2042_s3 = smov [#allocation7]  }
  0x34   :  { %s40_s29 = sshll.u32 %s2041_s28, 4  ;;  %s72_s0 = sshll.u32 %s2042_s3, 4  ;;  %s41_s29 = int_to_ptr.vmem [resolvable:$true] %s40_s29  ;;  %s73_s0 = int_to_ptr.vmem [resolvable:$true] %s72_s0 }
  0x35   :  { %s2610_s5 = sld [smem:[#allocation20_spill]] }
  0x3b   :  { %s1897_s1 = scalar_lea.hbm %s2610_s5, 32 }
  0x3c   :  { %p1898_p2 = scmp.ne.s32.totalorder %s2610_s5, %s1897_s1  ;;  %p1901_p3 = scmp.lt.u32.totalorder %s1897_s1, %s2610_s5 }
  0x3e   :  { %p1903_p4 = pnand %p1901_p3, %p1898_p2 }
  0x40   :  { %1906 = shalt.err (!%p1903_p4)
}
  0x41   :  { %s1907_s11 = scalar_lea.vmem %s41_s29, 32  ;;  %p1912_p6 = scmp.lt.s32.totalorder %s41_s29, %s41_s29 }
  0x42   :  { %p1908_p5 = scmp.ne.s32.totalorder %s41_s29, %s1907_s11  ;;  %p1913_p7 = scmp.lt.s32.totalorder %s1907_s11, %s1907_s11 }
  0x44   :  { %p1914_p8 = por %p1913_p7, %p1912_p6 }
  0x46   :  { %p1915_p9 = pnand %p1914_p8, %p1908_p5 }
  0x48   :  { %1918 = shalt.err (!%p1915_p9)
}
  0x49   :  { %43 = dma.hbm_to_vmem [thread:$0]  %s2610_s5, 32, %s41_s29, [#allocation3]  }
  0x4a   :  { %s1919_s3 = scalar_lea.hbm %s2578_s8, 16 }
  0x4b   :  { %p1920_p10 = scmp.ne.s32.totalorder %s2578_s8, %s1919_s3  ;;  %p1923_p11 = scmp.lt.u32.totalorder %s1919_s3, %s2578_s8 }
  0x4d   :  { %p1925_p12 = pnand %p1923_p11, %p1920_p10 }
  0x4f   :  { %1928 = shalt.err (!%p1925_p12)
}
  0x50   :  { %s1929_s2 = scalar_lea.vmem %s73_s0, 16  ;;  %s1933_s27 = scalar_lea.vmem %s73_s0, 32 }
  0x51   :  { %p1930_p13 = scmp.ne.s32.totalorder %s73_s0, %s1929_s2  ;;  %p1934_p0 = scmp.lt.s32.totalorder %s73_s0, %s73_s0 }
  0x52   :  { %p1935_p1 = scmp.lt.s32.totalorder %s1933_s27, %s1929_s2 }
  0x54   :  { %p1936_p2 = por %p1935_p1, %p1934_p0 }
  0x56   :  { %p1937_p3 = pnand %p1936_p2, %p1930_p13 }
  0x58   :  { %1940 = shalt.err (!%p1937_p3)
}
  0x59   :  { %75 = dma.hbm_to_vmem [thread:$0]  %s2578_s8, 16, %s73_s0, [#allocation6]  }
  0x5a   :  { %s2043_s7 = smov [#allocation10]   ;;  %s1941_s26 = scalar_lea.hbm %s2583_s13, 16 }
  0x5b   :  { %s98_s11 = sshll.u32 %s2043_s7, 4  ;;  %p1942_p4 = scmp.ne.s32.totalorder %s2583_s13, %s1941_s26  ;;  %s99_s11 = int_to_ptr.vmem [resolvable:$true] %s98_s11 }
  0x5c   :  { %p1945_p5 = scmp.lt.u32.totalorder %s1941_s26, %s2583_s13 }
  0x5e   :  { %p1947_p6 = pnand %p1945_p5, %p1942_p4 }
  0x60   :  { %1950 = shalt.err (!%p1947_p6)
}
  0x61   :  { %s1951_s1 = scalar_lea.vmem %s99_s11, 16  ;;  %s1955_s8 = scalar_lea.vmem %s99_s11, 32 }
  0x62   :  { %p1952_p7 = scmp.ne.s32.totalorder %s99_s11, %s1951_s1  ;;  %p1956_p8 = scmp.lt.s32.totalorder %s99_s11, %s99_s11 }
  0x63   :  { %p1957_p9 = scmp.lt.s32.totalorder %s1955_s8, %s1951_s1 }
  0x65   :  { %p1958_p10 = por %p1957_p9, %p1956_p8 }
  0x67   :  { %p1959_p11 = pnand %p1958_p10, %p1952_p7 }
  0x69   :  { %1962 = shalt.err (!%p1959_p11)
}
  0x6a   :  { %101 = dma.hbm_to_vmem [thread:$0]  %s2583_s13, 16, %s99_s11, [#allocation9]  }
  0x6b   :  { %2029 = dma.done.wait [#allocation3], 32  }
  0x6c   :  { %2030 = vsyncadd [#allocation3], 4294967264 }
  0x6d   :  { %2031 = dma.done.wait [#allocation6], 48  }
  0x6e   :  { %2032 = vsyncadd [#allocation6], 4294967248 }
  0x6f   :  { %2033 = dma.done.wait [#allocation9], 48  }
  0x70   :  { %2034 = vsyncadd [#allocation9], 4294967248  ;;  %v2044_v0 = vmov 0   ;;  %v2045_v1 = vmov 0.0|0.0   ;;  %vm2046_vm0 = vmmov 0   ;;  %v2047_v2 = vmov 0.0  }
  0x71   :  { %1834 = vset.pattern.permute.xlu0 %v2044_v0  ;;  %1741 = vmatprep.subr.bf16.mxu0 %v2045_v1  ;;  %s2611_s27 = sld [smem:[#allocation21_spill]]  ;;  %s2612_s7 = sld [smem:[#allocation24_spill]]  ;;  %vm151_vm1 = vcmask 130048   ;;  %v515_v20 = vld [vmem:[%s2579_s9 + $0x20] sm:$0xff]  ;;  %v516_v21 = vld [vmem:[%s2579_s9 + $0x28] sm:$0xff]  ;;  %vm226_vm2 = vcmask 261120   ;;  %v300_v37 = vlaneseq }
  0x72   :  { %1604 = vmatprep.mubr.msk.f32.mxu0 %vm2046_vm0, %v2047_v2  ;;  %1744 = vmatprep.subr.bf16.mxu1 %v2045_v1  ;;  %s2613_s28 = sld [smem:[#allocation25_spill]]  ;;  %s2614_s2 = sld [smem:[#allocation23_spill]]  ;;  %v132_v22 = vld [vmem:[#allocation2] sm:$0x3]  ;;  %v1763_v25 = vpack.c.bf16 %v516_v21, %v515_v20  ;;  %v511_v28 = vld [vmem:[%s2579_s9] sm:$0xff]  ;;  %v512_v29 = vld [vmem:[%s2579_s9 + $0x8] sm:$0xff] }
  0x73   :  { %1615 = vmatprep.mubr.msk.f32.mxu1 %vm2046_vm0, %v2047_v2  ;;  %s2615_s0 = sld [smem:[#allocation22_spill]]  ;;  %v1766_v31 = vpack.c.bf16 %v512_v29, %v511_v28  ;;  %v513_v32 = vld [vmem:[%s2579_s9 + $0x10] sm:$0xff]  ;;  %v514_v33 = vld [vmem:[%s2579_s9 + $0x18] sm:$0xff]  ;;  %v301_v38 = vshrl.u32 %v300_v37, 7  ;;  %s2048_s9 = smov 64   ;;  %vm503_vm3 = vcmask 254976  }
  0x74   :  { %v1769_v34 = vpack.c.bf16 %v514_v33, %v513_v32  ;;  %v139_v40 = vld [vmem:[#allocation5] sm:$0x3]  ;;  %s2616_s24 = sld [smem:[#allocation27_spill]]  ;;  %s2050_s5 = smov 96   ;;  %v874_v29 = vld [vmem:[%s2584_s14] sm:$0xff]  ;;  %vm1457_vm4 = vcmask 123904  }
  0x75   :  { %v2332_v39 = vsub.s32 1, %v301_v38  ;;  %v2334_v41 = vsub.s32 0, %v301_v38  ;;  %v668_v21 = vld [vmem:[%s2580_s10 + $0x10] sm:$0xff]  ;;  %1462 = vst.msk [vmem:[#allocation12] sm:$0x3] %vm1457_vm4, %v2047_v2 }
  0x76   :  { %v1517_v32 = vld [vmem:[#allocation7] ss:$0 sm:$0xff] }
  0x77   :  { %v131_v3 = vld [vmem:[%s2611_s27] sm:$0x3]  ;;  %v150_v5 = vld [vmem:[%s2612_s7 + $0x28] sm:$0xff]  ;;  %v147_v14 = vld [vmem:[%s2612_s7 + $0x10] sm:$0xff]  ;;  %v312_v42 = vrot.slane %v139_v40, %v2332_v39  ;;  %v303_v44 = vrot.slane %v139_v40, %v2334_v41 }
  0x78   :  { %v149_v4 = vld [vmem:[%s2612_s7 + $0x20] sm:$0xff]  ;;  %135 = vperm.xlu0 %1834, %v131_v3   ;;  %v306_v8 = vld [vmem:[%s2613_s28 + $0x8] sm:$0xff]  ;;  %v148_v15 = vld [vmem:[%s2612_s7 + $0x18] sm:$0xff] }
  0x79   :  { %v1742_v6 = vpack.c.bf16 %v150_v5, %v149_v4  ;;  %v305_v7 = vld [vmem:[%s2613_s28] sm:$0xff]  ;;  %v146_v10 = vld [vmem:[%s2612_s7 + $0x8] sm:$0xff]  ;;  %v307_v16 = vld [vmem:[%s2613_s28 + $0x10] sm:$0xff]  ;;  %v1748_v18 = vpack.c.bf16 %v148_v15, %v147_v14 }
  0x7a   :  { %v145_v9 = vld [vmem:[%s2612_s7] sm:$0xff]  ;;  %v1751_v12 = vpack.c.bf16 %v306_v8, %v305_v7  ;;  %v308_v17 = vld [vmem:[%s2613_s28 + $0x18] sm:$0xff]  ;;  %s2049_s7 = smov 32   ;;  %v418_v7 = vld [vmem:[%s2616_s24 + $0x10] sm:$0xff] }
  0x7b   :  { %1743 = vmatpush3.bf16.msra.mxu0 %v1742_v6  ;;  %v1512_v11 = vld [vmem:[%s2614_s2 + $0x2] sm:$0x3]  ;;  %v1745_v13 = vpack.c.bf16 %v146_v10, %v145_v9  ;;  %v1754_v19 = vpack.c.bf16 %v308_v17, %v307_v16  ;;  %v1520_v30 = vld [vmem:[%s2614_s2 + $0x4] sm:$0x3]  ;;  %v417_v6 = vld [vmem:[%s2616_s24 + $0x8] sm:$0xff] }
  0x7c   :  { %1750 = vmatprep.subr.bf16.mxu0 %v2045_v1  ;;  %v1511_v23 = vld [vmem:[%s2615_s0 + $0x2] sm:$0x3]  ;;  %v419_v9 = vld [vmem:[%s2616_s24 + $0x18] sm:$0xff] }
  0x7d   :  { %1746 = vmatpush3.bf16.msra.mxu1 %v1745_v13  ;;  %v416_v5 = vld [vmem:[%s2616_s24] sm:$0xff]  ;;  %v1760_v10 = vpack.c.bf16 %v419_v9, %v418_v7  ;;  %v1034_v9 = vld [vmem:[%s2586_s16 + $0x30] sm:$0xff] }
  0x7e   :  { %1605 = vmatmul.mubr.msk.f32.vlgmr.msra.gmra.mrb[0].mxu0 %vm151_vm1, %v1512_v11  ;;  %1747 = vmatprep.subr.bf16.mxu1 %v2045_v1  ;;  %v1757_v8 = vpack.c.bf16 %v417_v6, %v416_v5 }
  0x7f   :  { %1752 = vmatpush3.bf16.msra.mxu0 %v1751_v12  ;;  %1626 = vmatprep.mubr.msk.f32.mxu0 %vm2046_vm0, %v2047_v2 }
  0x80   :  { %1753 = vmatprep.subr.bf16.mxu0 %v2045_v1 }
  0x81   :  { %1749 = vmatpush3.bf16.msra.mxu1 %v1748_v18  ;;  %v666_v18 = vld [vmem:[%s2580_s10] sm:$0xff] }
  0x82   :  { %1756 = vmatprep.subr.bf16.mxu1 %v2045_v1 }
  0x83   :  { %1755 = vmatpush3.bf16.msra.mxu0 %v1754_v19  ;;  %v667_v19 = vld [vmem:[%s2580_s10 + $0x8] sm:$0xff] }
  0x84   :  { %1762 = vmatprep.subr.bf16.mxu0 %v2045_v1  ;;  %v1772_v20 = vpack.c.bf16 %v667_v19, %v666_v18  ;;  %v1525_v18 = vld [vmem:[#allocation10] ss:$0 sm:$0xff] }
  0xf7   :  { %v2294_v24 = vpop.permute.xlu0 %135 }
  0xf8   :  { %v2297_v26 = vmul.f32 %v2294_v24, %v132_v22  ;;  %v142_v27 = vmul.f32 %v1511_v23, %v2294_v24  ;;  %v669_v22 = vld [vmem:[%s2580_s10 + $0x18] sm:$0xff] }
  0xfa   :  { %1616 = vmatmul.mubr.msk.f32.vlgmr.msra.gmra.mrb[0].mxu1 %vm226_vm2, %v2297_v26  ;;  %1627 = vmatmul.mubr.msk.f32.vlgmr.msra.gmra.mrb[2].mxu0 %vm226_vm2, %v142_v27 }
  0xfb   :  { %1764 = vmatpush3.bf16.msra.mxu0 %v1763_v25  ;;  %1644 = vmatprep.mubr.msk.f32.mxu0 %vm2046_vm0, %v2047_v2  ;;  %v1775_v25 = vpack.c.bf16 %v669_v22, %v668_v21 }
  0xfc   :  { %1765 = vmatprep.subr.bf16.mxu0 %v2045_v1  ;;  %1637 = vmatprep.mubr.msk.f32.mxu1 %vm2046_vm0, %v2047_v2 }
  0xfd   :  { %1758 = vmatpush3.bf16.msra.mxu1 %v1757_v8 }
  0xfe   :  { %1645 = vmatmul.mubr.msk.f32.vlgmr.msra.gmra.mrb[4].mxu0 %vm151_vm1, %v1520_v30  ;;  %1759 = vmatprep.subr.bf16.mxu1 %v2045_v1  ;;  %v875_v30 = vld [vmem:[%s2584_s14 + $0x8] sm:$0xff] }
  0xff   :  { %1767 = vmatpush3.bf16.msra.mxu0 %v1766_v31  ;;  %1655 = vmatprep.mubr.msk.f32.mxu0 %vm2046_vm0, %v2047_v2  ;;  %v1784_v31 = vpack.c.bf16 %v875_v30, %v874_v29  ;;  %v1259_v29 = vld [vmem:[%s2587_s17 + $0x8] sm:$0xff]  ;;  %v1528_v30 = vld [vmem:[%s2585_s15] ss:$0 sm:$0xff] }
 0x100   :  { %1768 = vmatprep.subr.bf16.mxu0 %v2045_v1 }
 0x101   :  { %1761 = vmatpush3.bf16.msra.mxu1 %v1760_v10  ;;  %v1035_v10 = vld [vmem:[%s2586_s16 + $0x38] sm:$0xff] }
 0x102   :  { %1771 = vmatprep.subr.bf16.mxu1 %v2045_v1 }
 0x103   :  { %1770 = vmatpush3.bf16.msra.mxu0 %v1769_v34 }
 0x104   :  { %1777 = vmatprep.subr.bf16.mxu0 %v2045_v1 }
 0x106   :  { %1656 = vmatmul.mubr.msk.f32.vlgmr.msra.gmra.mrb[6].mxu0 %vm226_vm2, %v2297_v26 }
 0x107   :  { %1677 = vmatprep.mubr.msk.f32.mxu0 %vm2046_vm0, %v2047_v2 }
 0x151   :  { %v221_v35 = vpop.f32.mrb[0].mxu0 }
 0x152   :  { %v1606_v36 = vpop.f32.mrb[1].mxu0  ;;  %v225_v43 = vmul.f32 %v221_v35, %v2294_v24 }
 0x153   :  { %v505_v36 = vld [vmem:[#allocation8] sm:$0x3] }
 0x154   :  { %v673_v37 = vrot.slane %v505_v36, %v2332_v39 }
 0x1cd   :  { %v296_v45 = vpop.f32.mrb[0].mxu1  ;;  %v382_v46 = vpop.f32.mrb[2].mxu0 }
 0x1ce   :  { %v297_v47 = vadd.f32 %v296_v45, %v225_v43  ;;  %v383_v48 = vadd.f32 %v382_v46, %v312_v42  ;;  %v1617_v49 = vpop.f32.mrb[1].mxu1  ;;  %v1628_v50 = vpop.f32.mrb[3].mxu0  ;;  %v664_v43 = vrot.slane %v505_v36, %v2334_v41 }
 0x1d0   :  { %v304_v51 = vadd.f32 %v303_v44, %v297_v47  ;;  %394 = vrot.lane.b32.xlu0 %v383_v48, %s2048_s9 }
 0x1d1   :  { %v586_v52 = vpop.f32.mrb[4].mxu0 }
 0x1d2   :  { %v1646_v53 = vpop.f32.mrb[5].mxu0  ;;  %v590_v54 = vmul.f32 %v586_v52, %v2294_v24  ;;  %v386_v58 = vadd.f32 %v383_v48, %v304_v51 }
 0x1d4   :  { %410 = vrot.lane.b32.xlu0 %v142_v27, %s2049_s7  ;;  %v1516_v59 = vmul.f32 -1.442695, %v386_v58  ;;  %v1519_v27 = vld [vmem:[%s2615_s0 + $0x4] sm:$0x3]  ;;  %v780_v58 = vld [vmem:[%s2582_s12 + $0x18] sm:$0xff] }
 0x1d5   :  { %v508_v28 = vmul.f32 %v1519_v27, %v2294_v24 }
 0x1d6   :  { %1835 = vpow2.f32 %v1516_v59 }
 0x1d9   :  { %v657_v55 = vpop.f32.mrb[6].mxu0 }
 0x1da   :  { %v2342_v56 = vadd.f32 %v657_v55, %v590_v54  ;;  %v1657_v57 = vpop.f32.mrb[7].mxu0  ;;  %v777_v54 = vld [vmem:[%s2582_s12] sm:$0xff]  ;;  %v778_v55 = vld [vmem:[%s2582_s12 + $0x8] sm:$0xff] }
 0x1db   :  { %v1778_v57 = vpack.c.bf16 %v778_v55, %v777_v54 }
 0x1dc   :  { %v665_v44 = vadd.f32 %v664_v43, %v2342_v56  ;;  %v779_v56 = vld [vmem:[%s2582_s12 + $0x10] sm:$0xff]  ;;  %v865_v43 = vld [vmem:[%s2588_s18] sm:$0x3] }
 0x1dd   :  { %1779 = vmatpush3.bf16.msra.mxu0 %v1778_v57  ;;  %v1781_v59 = vpack.c.bf16 %v780_v58, %v779_v56 }
 0x1de   :  { %1780 = vmatprep.subr.bf16.mxu0 %v2045_v1 }
 0x1e0   :  { %v1836_v60 = vpop.eup %1835 }
 0x1e1   :  { %v390_v61 = vadd.f32 1.0, %v1836_v60  ;;  %1782 = vmatpush3.bf16.msra.mxu0 %v1781_v59 }
 0x1e2   :  { %1789 = vmatprep.subr.bf16.mxu0 %v2045_v1 }
 0x1e3   :  { %1837 = vrcp.f32 %v390_v61  ;;  %v956_v61 = vld [vmem:[%s2584_s14 + $0x10] sm:$0xff] }
 0x1ed   :  { %v1838_v62 = vpop.eup %1837 }
 0x1ee   :  { %v404_v13 = vsub.f32 1.0, %v1838_v62 }
 0x242   :  { %v395_v63 = vpop.permute.xlu0 %394 }
 0x243   :  { %v397_v0 = vmul.f32 %v1838_v62, %v395_v63 }
 0x245   :  { %399 = vrot.lane.b32.xlu1 %v397_v0, %s2048_s9 }
 0x246   :  { %v411_v12 = vpop.permute.xlu0 %410 }
 0x247   :  { %v413_v15 = vmul.f32 %v1838_v62, %v411_v12  ;;  %v957_v62 = vld [vmem:[%s2584_s14 + $0x18] sm:$0xff]  ;;  %v1032_v12 = vld [vmem:[%s2586_s16 + $0x20] sm:$0xff] }
 0x248   :  { %v1787_v63 = vpack.c.bf16 %v957_v62, %v956_v61  ;;  %v1370_v61 = vld [vmem:[%s2589_s19 + $0x8] sm:$0xff]  ;;  %v1371_v62 = vld [vmem:[%s2589_s19 + $0x10] sm:$0xff] }
 0x2b7   :  { %v400_v3 = vpop.permute.xlu1 %399 }
 0x2b8   :  { %v402_v4 = vadd.f32 %v400_v3, %v304_v51 }
 0x2ba   :  { %1839 = vtanh.f32 %v402_v4 }
 0x2c4   :  { %v1840_v11 = vpop.eup %1839 }
 0x2c5   :  { %406 = vrot.lane.b32.xlu1 %v1840_v11, %s2050_s5  ;;  %v1790_v11 = vpack.c.bf16 %v1035_v10, %v1034_v9 }
 0x337   :  { %v407_v14 = vpop.permute.xlu1 %406 }
 0x338   :  { %v409_v16 = vmul.f32 %v407_v14, %v404_v13  ;;  %v1033_v13 = vld [vmem:[%s2586_s16 + $0x28] sm:$0xff]  ;;  %v868_v14 = vld [vmem:[%s2614_s2] sm:$0x3] }
 0x33a   :  { %v414_v17 = vadd.f32 %v413_v15, %v409_v16  ;;  %v1793_v15 = vpack.c.bf16 %v1033_v13, %v1032_v12  ;;  %v869_v16 = vld [vmem:[%s2586_s16] sm:$0xff] }
 0x33c   :  { %427 = vrot.lane.b32.xlu1 %v414_v17, %s2050_s5  ;;  %v870_v17 = vld [vmem:[%s2586_s16 + $0x8] sm:$0xff] }
 0x3ae   :  { %v428_v23 = vpop.permute.xlu1 %427 }
 0x3af   :  { %504 = vst.msk [vmem:[#allocation11 + $0x2] sm:$0x3] %vm503_vm3, %v428_v23  ;;  %1638 = vmatmul.mubr.msk.f32.vlgmr.msra.gmra.mrb[2].mxu1 %vm226_vm2, %v428_v23  ;;  %v871_v23 = vld [vmem:[%s2586_s16 + $0x10] sm:$0xff] }
 0x3b0   :  { %1773 = vmatpush3.bf16.msra.mxu1 %v1772_v20  ;;  %1666 = vmatprep.mubr.msk.f32.mxu1 %vm2046_vm0, %v2047_v2  ;;  %v1796_v20 = vpack.c.bf16 %v870_v17, %v869_v16 }
 0x3b1   :  { %1774 = vmatprep.subr.bf16.mxu1 %v2045_v1 }
 0x3b4   :  { %1776 = vmatpush3.bf16.msra.mxu1 %v1775_v25  ;;  %v872_v25 = vld [vmem:[%s2586_s16 + $0x18] sm:$0xff] }
 0x3b5   :  { %1783 = vmatprep.subr.bf16.mxu1 %v2045_v1  ;;  %v1799_v27 = vpack.c.bf16 %v872_v25, %v871_v23 }
 0x3b7   :  { %1667 = vmatmul.mubr.msk.f32.vlgmr.msra.gmra.mrb[4].mxu1 %vm226_vm2, %v508_v28 }
 0x3b8   :  { %1684 = vmatprep.mubr.msk.f32.mxu1 %vm2046_vm0, %v2047_v2  ;;  %1785 = vmatpush3.bf16.msra.mxu1 %v1784_v31 }
 0x3b9   :  { %1786 = vmatprep.subr.bf16.mxu1 %v2045_v1 }
 0x482   :  { %v497_v33 = vpop.f32.mrb[2].mxu1 }
 0x483   :  { %v498_v34 = vadd.f32 %v1517_v32, %v497_v33  ;;  %v1639_v35 = vpop.f32.mrb[3].mxu1 }
 0x484   :  { %v1261_v35 = vld [vmem:[%s2587_s17 + $0x18] sm:$0xff] }
 0x485   :  { %1685 = vmatmul.mubr.msk.f32.vlgmr.msra.gmra.mrb[6].mxu1 %vm151_vm1, %v498_v34 }
 0x486   :  { %1691 = vmatprep.mubr.msk.f32.mxu1 %vm2046_vm0, %v2047_v2  ;;  %1788 = vmatpush3.bf16.msra.mxu1 %v1787_v63 }
 0x487   :  { %1795 = vmatprep.subr.bf16.mxu1 %v2045_v1 }
 0x48a   :  { %v743_v38 = vpop.f32.mrb[4].mxu1 }
 0x48b   :  { %v744_v40 = vadd.f32 %v743_v38, %v673_v37  ;;  %v1668_v42 = vpop.f32.mrb[5].mxu1  ;;  %v866_v37 = vld [vmem:[%s2615_s0] sm:$0x3] }
 0x48c   :  { %v867_v42 = vmul.f32 %v866_v37, %v2294_v24 }
 0x48d   :  { %755 = vrot.lane.b32.xlu0 %v744_v40, %s2048_s9  ;;  %v747_v45 = vadd.f32 %v744_v40, %v665_v44 }
 0x48f   :  { %v1524_v46 = vmul.f32 -1.442695, %v747_v45 }
 0x491   :  { %1841 = vpow2.f32 %v1524_v46 }
 0x49b   :  { %v1842_v47 = vpop.eup %1841 }
 0x49c   :  { %v751_v48 = vadd.f32 1.0, %v1842_v47  ;;  %v1256_v47 = vrot.slane %v865_v43, %v2334_v41 }
 0x49e   :  { %1843 = vrcp.f32 %v751_v48 }
 0x4a8   :  { %v1844_v49 = vpop.eup %1843 }
 0x4a9   :  { %v765_v3 = vsub.f32 1.0, %v1844_v49 }
 0x4ff   :  { %v756_v50 = vpop.permute.xlu0 %755 }
 0x500   :  { %v758_v51 = vmul.f32 %v1844_v49, %v756_v50  ;;  %v1265_v50 = vrot.slane %v865_v43, %v2332_v39 }
 0x502   :  { %760 = vrot.lane.b32.xlu1 %v758_v51, %s2048_s9 }
 0x506   :  { %771 = vrot.lane.b32.xlu1 %v508_v28, %s2049_s7  ;;  %v1258_v28 = vld [vmem:[%s2587_s17] sm:$0xff] }
 0x507   :  { %v1802_v32 = vpack.c.bf16 %v1259_v29, %v1258_v28 }
 0x574   :  { %v761_v52 = vpop.permute.xlu1 %760 }
 0x575   :  { %v763_v53 = vadd.f32 %v761_v52, %v665_v44 }
 0x577   :  { %1845 = vtanh.f32 %v763_v53 }
 0x578   :  { %v772_v0 = vpop.permute.xlu1 %771 }
 0x579   :  { %v774_v5 = vmul.f32 %v1844_v49, %v772_v0  ;;  %v1372_v0 = vld [vmem:[%s2589_s19 + $0x18] sm:$0xff] }
 0x581   :  { %v1846_v60 = vpop.eup %1845 }
 0x582   :  { %767 = vrot.lane.b32.xlu0 %v1846_v60, %s2050_s5  ;;  %v1369_v60 = vld [vmem:[%s2589_s19] sm:$0xff]  ;;  %s2051_s19 = smov [#allocation11]  }
 0x583   :  { %v1808_v63 = vpack.c.bf16 %v1370_v61, %v1369_v60  ;;  %s1468_s8 = sshll.u32 %s2051_s19, 4  ;;  %s1469_s8 = int_to_ptr.vmem [resolvable:$true] %s1468_s8 }
 0x584   :  { %s1963_s10 = scalar_lea.vmem %s1469_s8, 96  ;;  %p1968_p13 = scmp.lt.s32.totalorder %s1469_s8, %s1469_s8 }
 0x585   :  { %p1964_p12 = scmp.ne.s32.totalorder %s1469_s8, %s1963_s10  ;;  %p1969_p0 = scmp.lt.s32.totalorder %s1963_s10, %s1963_s10 }
 0x587   :  { %p1970_p1 = por %p1969_p0, %p1968_p13 }
 0x589   :  { %p1971_p2 = pnand %p1970_p1, %p1964_p12 }
 0x5f4   :  { %v768_v4 = vpop.permute.xlu0 %767 }
 0x5f5   :  { %v770_v6 = vmul.f32 %v768_v4, %v765_v3  ;;  %v1811_v3 = vpack.c.bf16 %v1372_v0, %v1371_v62 }
 0x5f7   :  { %v775_v7 = vadd.f32 %v774_v5, %v770_v6 }
 0x5f9   :  { %788 = vrot.lane.b32.xlu0 %v775_v7, %s2050_s5 }
 0x66b   :  { %v789_v8 = vpop.permute.xlu0 %788 }
 0x66c   :  { %864 = vst.msk [vmem:[#allocation11 + $0x4] sm:$0x3] %vm503_vm3, %v789_v8  ;;  %1678 = vmatmul.mubr.msk.f32.vlgmr.msra.gmra.mrb[8].mxu0 %vm226_vm2, %v789_v8 }
 0x66d   :  { %1698 = vmatprep.mubr.msk.f32.mxu0 %vm2046_vm0, %v2047_v2  ;;  %1791 = vmatpush3.bf16.msra.mxu0 %v1790_v11 }
 0x66e   :  { %1792 = vmatprep.subr.bf16.mxu0 %v2045_v1 }
 0x670   :  { %1699 = vmatmul.mubr.msk.f32.vlgmr.msra.gmra.mrb[10].mxu0 %vm151_vm1, %v868_v14 }
 0x671   :  { %1794 = vmatpush3.bf16.msra.mxu0 %v1793_v15  ;;  %1705 = vmatprep.mubr.msk.f32.mxu0 %vm2046_vm0, %v2047_v2 }
 0x672   :  { %1801 = vmatprep.subr.bf16.mxu0 %v2045_v1 }
 0x73f   :  { %v858_v19 = vpop.f32.mrb[8].mxu0 }
 0x740   :  { %v859_v21 = vadd.f32 %v1525_v18, %v858_v19  ;;  %v1679_v22 = vpop.f32.mrb[9].mxu0 }
 0x742   :  { %1692 = vmatmul.mubr.msk.f32.vlgmr.msra.gmra.mrb[6].mxu1 %vm151_vm1, %v859_v21 }
 0x743   :  { %1797 = vmatpush3.bf16.msra.mxu1 %v1796_v20  ;;  %1716 = vmatprep.mubr.msk.f32.mxu1 %vm2046_vm0, %v2047_v2 }
 0x744   :  { %1798 = vmatprep.subr.bf16.mxu1 %v2045_v1 }
 0x747   :  { %1800 = vmatpush3.bf16.msra.mxu1 %v1799_v27 }
 0x748   :  { %1807 = vmatprep.subr.bf16.mxu1 %v2045_v1 }
 0x74a   :  { %1717 = vmatmul.mubr.msk.f32.vlgmr.msra.gmra.mrb[8].mxu1 %vm226_vm2, %v2297_v26  ;;  %v1260_v26 = vld [vmem:[%s2587_s17 + $0x10] sm:$0xff] }
 0x74b   :  { %1738 = vmatprep.mubr.msk.f32.mxu1 %vm2046_vm0, %v2047_v2  ;;  %v1805_v36 = vpack.c.bf16 %v1261_v35, %v1260_v26  ;;  %1809 = vmatpush3.bf16.msra.mxu1 %v1808_v63 }
 0x74c   :  { %1810 = vmatprep.subr.bf16.mxu1 %v2045_v1 }
 0x74f   :  { %1812 = vmatpush3.bf16.msra.mxu1 %v1811_v3 }
 0x815   :  { %v1027_v31 = vpop.f32.mrb[6].mxu1 }
 0x816   :  { %v1813_v33 = vadd.f32 %v1528_v30, %v1027_v31  ;;  %v1693_v34 = vpop.f32.mrb[7].mxu1 }
 0x818   :  { %1706 = vmatmul.mubr.msk.f32.vlgmr.msra.gmra.mrb[10].mxu0 %vm151_vm1, %v1813_v33 }
 0x819   :  { %1803 = vmatpush3.bf16.msra.mxu0 %v1802_v32  ;;  %1727 = vmatprep.mubr.msk.f32.mxu0 %vm2046_vm0, %v2047_v2 }
 0x81a   :  { %1804 = vmatprep.subr.bf16.mxu0 %v2045_v1 }
 0x81d   :  { %v1249_v38 = vpop.f32.mrb[8].mxu1  ;;  %1806 = vmatpush3.bf16.msra.mxu0 %v1805_v36 }
 0x81e   :  { %v1718_v40 = vpop.f32.mrb[9].mxu1 }
 0x820   :  { %1728 = vmatmul.mubr.msk.f32.vlgmr.msra.gmra.mrb[12].mxu0 %vm226_vm2, %v867_v42 }
 0x8eb   :  { %v1178_v44 = vpop.f32.mrb[10].mxu0 }
 0x8ec   :  { %v1182_v45 = vmul.f32 %v1178_v44, %v2294_v24  ;;  %v1707_v46 = vpop.f32.mrb[11].mxu0 }
 0x8ee   :  { %v1250_v48 = vadd.f32 %v1249_v38, %v1182_v45 }
 0x8f0   :  { %v1257_v49 = vadd.f32 %v1256_v47, %v1250_v48 }
 0x8f3   :  { %v1335_v51 = vpop.f32.mrb[12].mxu0 }
 0x8f4   :  { %v1336_v52 = vadd.f32 %v1335_v51, %v1265_v50  ;;  %v1729_v53 = vpop.f32.mrb[13].mxu0 }
 0x8f6   :  { %1347 = vrot.lane.b32.xlu1 %v1336_v52, %s2048_s9  ;;  %v1339_v54 = vadd.f32 %v1336_v52, %v1257_v49 }
 0x8f8   :  { %v1534_v55 = vmul.f32 -1.442695, %v1339_v54 }
 0x8fa   :  { %1847 = vpow2.f32 %v1534_v55 }
 0x904   :  { %v1848_v56 = vpop.eup %1847 }
 0x905   :  { %v1343_v57 = vadd.f32 1.0, %v1848_v56 }
 0x907   :  { %1849 = vrcp.f32 %v1343_v57 }
 0x911   :  { %v1850_v58 = vpop.eup %1849 }
 0x912   :  { %v1357_v6 = vsub.f32 1.0, %v1850_v58 }
 0x968   :  { %v1348_v24 = vpop.permute.xlu1 %1347 }
 0x969   :  { %v1350_v59 = vmul.f32 %v1850_v58, %v1348_v24 }
 0x96b   :  { %1352 = vrot.lane.b32.xlu0 %v1350_v59, %s2048_s9 }
 0x96f   :  { %1363 = vrot.lane.b32.xlu0 %v867_v42, %s2049_s7 }
 0x9dd   :  { %v1353_v41 = vpop.permute.xlu0 %1352 }
 0x9de   :  { %v1355_v39 = vadd.f32 %v1353_v41, %v1257_v49 }
 0x9e0   :  { %1851 = vtanh.f32 %v1355_v39 }
 0x9e1   :  { %v1364_v5 = vpop.permute.xlu0 %1363 }
 0x9e2   :  { %v1366_v8 = vmul.f32 %v1850_v58, %v1364_v5 }
 0x9ea   :  { %v1852_v4 = vpop.eup %1851 }
 0x9eb   :  { %1359 = vrot.lane.b32.xlu1 %v1852_v4, %s2050_s5 }
 0xa5d   :  { %v1360_v7 = vpop.permute.xlu1 %1359 }
 0xa5e   :  { %v1362_v9 = vmul.f32 %v1360_v7, %v1357_v6 }
 0xa60   :  { %v1367_v10 = vadd.f32 %v1366_v8, %v1362_v9 }
 0xa62   :  { %1380 = vrot.lane.b32.xlu1 %v1367_v10, %s2050_s5 }
 0xad4   :  { %v1381_v11 = vpop.permute.xlu1 %1380 }
 0xad5   :  { %1455 = vst.msk [vmem:[#allocation11] sm:$0x3] %vm503_vm3, %v1381_v11  ;;  %1461 = vst.msk [vmem:[#allocation14] sm:$0x3] %vm503_vm3, %v1381_v11  ;;  %1739 = vmatmul.mubr.msk.f32.vlgmr.msra.gmra.mrb[10].mxu1 %vm226_vm2, %v1381_v11 }
 0xad6   :  { %1974 = shalt.err (!%p1971_p2)
}
 0xad7   :  { %s1975_s16 = scalar_lea.hbm %s2591_s21, 96 }
 0xad8   :  { %p1976_p3 = scmp.ne.s32.totalorder %s2591_s21, %s1975_s16  ;;  %p1979_p4 = scmp.lt.u32.totalorder %s1975_s16, %s2591_s21 }
 0xada   :  { %p1981_p5 = pnand %p1979_p4, %p1976_p3 }
 0xadc   :  { %1984 = shalt.err (!%p1981_p5)
}
 0xadd   :  { %s2052_s29 = smov 2   ;;  %v1535_v1 = vld [vmem:[%s2590_s20] ss:$0 sm:$0xff]  ;;  %s2053_s26 = smov [#allocation12]  }
 0xade   :  { %1474 = dma.vmem_to_hbm [thread:$0]  %s1469_s8, 96, %s2591_s21, [#allocation4], %s2049_s7, %s2049_s7, %s2052_s29  }
 0xadf   :  { %s1480_s17 = sshll.u32 %s2053_s26, 4  ;;  %s2054_s3 = smov [#allocation14]   ;;  %s1481_s17 = int_to_ptr.vmem [resolvable:$true] %s1480_s17 }
 0xae0   :  { %s1493_s18 = sshll.u32 %s2054_s3, 4  ;;  %s1985_s0 = scalar_lea.vmem %s1481_s17, 96  ;;  %s1494_s18 = int_to_ptr.vmem [resolvable:$true] %s1493_s18 }
 0xae1   :  { %p1986_p6 = scmp.ne.s32.totalorder %s1481_s17, %s1985_s0  ;;  %p1990_p7 = scmp.lt.s32.totalorder %s1481_s17, %s1481_s17 }
 0xae2   :  { %p1991_p8 = scmp.lt.s32.totalorder %s1985_s0, %s1985_s0 }
 0xae4   :  { %p1992_p9 = por %p1991_p8, %p1990_p7 }
 0xae6   :  { %p1993_p10 = pnand %p1992_p9, %p1986_p6 }
 0xba8   :  { %v1450_v2 = vpop.f32.mrb[10].mxu1 }
 0xba9   :  { %v1451_v12 = vadd.f32 %v1535_v1, %v1450_v2  ;;  %v1740_v13 = vpop.f32.mrb[11].mxu1 }
 0xbab   :  { %1458 = vst.msk [vmem:[#allocation12 + $0x2] sm:$0x3] %vm1457_vm4, %v1451_v12  ;;  %1460 = vst.msk [vmem:[#allocation12 + $0x4] sm:$0x3] %vm1457_vm4, %v1451_v12 }
 0xbac   :  { %1996 = shalt.err (!%p1993_p10)
}
 0xbad   :  { %s1997_s28 = scalar_lea.hbm %s2592_s22, 96 }
 0xbae   :  { %p1998_p11 = scmp.ne.s32.totalorder %s2592_s22, %s1997_s28  ;;  %p2001_p12 = scmp.lt.u32.totalorder %s1997_s28, %s2592_s22 }
 0xbb0   :  { %p2003_p13 = pnand %p2001_p12, %p1998_p11 }
 0xbb2   :  { %2006 = shalt.err (!%p2003_p13)
}
 0xbb3   :  { %1486 = dma.vmem_to_hbm [thread:$0]  %s1481_s17, 96, %s2592_s22, [#allocation13], %s2049_s7, %s2049_s7, %s2052_s29  }
 0xbb4   :  { %s2007_s8 = scalar_lea.vmem %s1494_s18, 32  ;;  %p2012_p1 = scmp.lt.s32.totalorder %s1494_s18, %s1494_s18 }
 0xbb5   :  { %p2008_p0 = scmp.ne.s32.totalorder %s1494_s18, %s2007_s8  ;;  %p2013_p2 = scmp.lt.s32.totalorder %s2007_s8, %s2007_s8 }
 0xbb7   :  { %p2014_p3 = por %p2013_p2, %p2012_p1 }
 0xbb9   :  { %p2015_p4 = pnand %p2014_p3, %p2008_p0 }
 0xbbb   :  { %2018 = shalt.err (!%p2015_p4)
}
 0xbbc   :  { %s2019_s12 = scalar_lea.hbm %s2593_s23, 32 }
 0xbbd   :  { %p2020_p5 = scmp.ne.s32.totalorder %s2593_s23, %s2019_s12  ;;  %p2023_p6 = scmp.lt.u32.totalorder %s2019_s12, %s2593_s23 }
 0xbbf   :  { %p2025_p7 = pnand %p2023_p6, %p2020_p5 }
 0xbc1   :  { %2028 = shalt.err (!%p2025_p7)
}
 0xbc2   :  { %1496 = dma.vmem_to_hbm [thread:$0]  %s1494_s18, 32, %s2593_s23, [#allocation13]  }
 0xbc3   :  { %2035 = dma.done.wait [#allocation4], 96  }
 0xbc4   :  { %2036 = vsyncadd [#allocation4], 4294967200 }
 0xbc5   :  { %2037 = dma.done.wait [#allocation13], 128  }
 0xbc6   :  { %2038 = vsyncadd [#allocation13], 4294967168 }
 0xbc7   :  { %1506 = vsyncpa [#allocation3], 1 }
 0xbc8   :  { %1507 = vsyncpa [#allocation6], 1 }
 0xbc9   :  { %1508 = vsyncpa [#allocation9], 1 }
 0xbca   :  { %1509 = vsyncpa [#allocation4], 1 }
 0xbcb   :  { %1510 = vsyncpa [#allocation13], 1 }

</bundles_post_ra>
